<compile_context>
chip_gen: v7x
topology: tpu7x:2x2x1
jax: 0.10.0
libtpu: 0.0.40
codegen_flags: <defaults>
</compile_context>

<pallas_src>
import jax
import jax.numpy as jnp
from jax.experimental import pallas as pl
from jax.experimental.pallas import tpu as pltpu


def _se_block_kernel(x_ref, w1t_ref, b1_ref, w2t_ref, b2_ref, o_ref, acc_ref):
    """One (batch-tile, spatial-tile) grid step.

    x_ref:   (TN, HW_TILE, C) f32  channels-last slab of the input
    w1t_ref: (C, hid)  f32  W1^T pre-scaled by 1/(H*W)  (mean folded in)
    b1_ref:  (1, hid)  f32
    w2t_ref: (hid, C)  f32
    b2_ref:  (1, C)    f32
    o_ref:   (TN, C)   f32  gate output (resident across the spatial axis)
    acc_ref: (TN, C)   f32  VMEM running spatial sum
    """
    s = pl.program_id(1)

    @pl.when(s == 0)
    def _():
        acc_ref[...] = jnp.zeros_like(acc_ref)

    # Squeeze: partial spatial sum. C stays on lanes -> pure VPU adds.
    acc_ref[...] += jnp.sum(x_ref[...], axis=1)

    @pl.when(s == pl.num_programs(1) - 1)
    def _():
        # Excitation epilogue (tiny MXU matmuls; mean scale folded into w1t).
        pooled = acc_ref[...]
        h = jnp.dot(pooled, w1t_ref[...], preferred_element_type=jnp.float32)
        h = jnp.maximum(h + b1_ref[...], 0.0)
        y = jnp.dot(h, w2t_ref[...], preferred_element_type=jnp.float32) + b2_ref[...]
        o_ref[...] = jax.nn.sigmoid(y)


def se_block(x, w1, b1, w2, b2, *, x_tile_budget_bytes=8 * 1024 * 1024):
    """SEBlock.forward: returns the sigmoid gate with shape (N, C, 1, 1).

    x:  (N, C, H, W) float32 (NCHW, PyTorch convention)
    w1: (hid, C), b1: (hid,)   -- nn.Linear(C, C // r)
    w2: (C, hid), b2: (C,)     -- nn.Linear(C // r, C)
    """
    N, C, H, W = x.shape
    HW = H * W
    hid = w1.shape[0]

    # Channels-last flatten so the reduction runs over the sublane/grid axis
    # and the (N, C) output / accumulator are lane-dense in C.
    x_flat = jnp.transpose(x, (0, 2, 3, 1)).reshape(N, HW, C).astype(jnp.float32)

    # PyTorch Linear computes x @ W^T + b; pre-transpose and fold the 1/(H*W)
    # mean scale into the first weight so the kernel accumulates a plain sum.
    w1t = w1.astype(jnp.float32).T / jnp.float32(HW)      # (C, hid)
    w2t = w2.astype(jnp.float32).T                        # (hid, C)
    b1_2d = b1.astype(jnp.float32).reshape(1, hid)
    b2_2d = b2.astype(jnp.float32).reshape(1, C)

    # --- Tile sizing: keep the double-buffered x tile well inside the smallest
    # per-generation scoped-VMEM budget (v7x: 64 MiB physical). ---
    TN = min(N, 8)
    n_pad = -(-N // TN) * TN

    bytes_per_spatial_row = TN * C * 4
    max_rows = max(8, x_tile_budget_bytes // bytes_per_spatial_row)
    hw_tile = min(HW, max_rows)
    hw_tile_up = -(-hw_tile // 8) * 8                      # sublane-align
    hw_tile = hw_tile_up if hw_tile_up <= max_rows else max(8, (hw_tile // 8) * 8)
    hw_pad = -(-HW // hw_tile) * hw_tile

    if n_pad != N or hw_pad != HW:
        # Zero padding: padded spatial rows do not change the sum; padded batch
        # rows are sliced off after the call.
        x_flat = jnp.pad(x_flat, ((0, n_pad - N), (0, hw_pad - HW), (0, 0)))

    grid = (n_pad // TN, hw_pad // hw_tile)

    out = pl.pallas_call(
        _se_block_kernel,
        out_shape=jax.ShapeDtypeStruct((n_pad, C), jnp.float32),
        grid_spec=pltpu.PrefetchScalarGridSpec(
            num_scalar_prefetch=0,
            grid=grid,
            in_specs=[
                pl.BlockSpec((TN, hw_tile, C), lambda n, s: (n, s, 0)),
                # Weights/biases: constant block index -> DMA'd once, stay resident.
                pl.BlockSpec((C, hid), lambda n, s: (0, 0)),
                pl.BlockSpec((1, hid), lambda n, s: (0, 0)),
                pl.BlockSpec((hid, C), lambda n, s: (0, 0)),
                pl.BlockSpec((1, C), lambda n, s: (0, 0)),
            ],
            out_specs=pl.BlockSpec((TN, C), lambda n, s: (n, 0)),
            scratch_shapes=[pltpu.VMEM((TN, C), jnp.float32)],
        ),
        compiler_params=pltpu.CompilerParams(
            # Batch tiles shard across TensorCores (v7x megacore); the spatial
            # reduction axis must stay sequential.
            dimension_semantics=("parallel", "arbitrary"),
            vmem_limit_bytes=48 * 1024 * 1024,
        ),
    )(x_flat, w1t, b1_2d, w2t, b2_2d)

    return out[:N].reshape(N, C, 1, 1)


if __name__ == "__main__":
    def torch_like_ref(x, w1, b1, w2, b2):
        s = jnp.mean(x, axis=(2, 3))
        h = jnp.maximum(s @ w1.T + b1, 0.0)
        y = jax.nn.sigmoid(h @ w2.T + b2)
        return y.reshape(x.shape[0], x.shape[1], 1, 1)

    key = jax.random.PRNGKey(0)

    # Case 1: SEBlock(in_channels=32, r=16) on a (2, 32, 16, 16) input.
    # Case 2: awkward shapes that exercise the batch/spatial padding paths.
    cases = [
        dict(N=2, C=32, H=16, W=16, r=16),
        dict(N=3, C=48, H=7, W=7, r=16),
    ]
    for cfg in cases:
        N, C, H, W, r = cfg["N"], cfg["C"], cfg["H"], cfg["W"], cfg["r"]
        hid = C // r
        key, kx, k1, k2, k3, k4 = jax.random.split(key, 6)

        x = jax.random.normal(kx, (N, C, H, W), dtype=jnp.float32)
        # Deterministic synthetic parameters (not loaded from a checkpoint).
        w1 = jax.random.normal(k1, (hid, C), dtype=jnp.float32) * 0.1   # Linear(C, C//r).weight
        b1 = jax.random.normal(k2, (hid,), dtype=jnp.float32) * 0.1     # Linear(C, C//r).bias
        w2 = jax.random.normal(k3, (C, hid), dtype=jnp.float32) * 0.1   # Linear(C//r, C).weight
        b2 = jax.random.normal(k4, (C,), dtype=jnp.float32) * 0.1       # Linear(C//r, C).bias

        out = jax.block_until_ready(se_block(x, w1, b1, w2, b2))
        ref = torch_like_ref(x, w1, b1, w2, b2)
        assert out.shape == (N, C, 1, 1)
        err = float(jnp.max(jnp.abs(out - ref)))
        assert jnp.allclose(out, ref, atol=1e-5, rtol=1e-5), f"case {cfg}: max err {err}"

    print("KERNEL_OK")
</pallas_src>

<mosaic_0001>
module attributes {stable_mosaic.version = 11 : i64} {
  func.func @_se_block_kernel(%arg0: i32, %arg1: i32, %arg2: memref<2x256x32xf32, #tpu.memory_space<vmem>>, %arg3: memref<32x2xf32, #tpu.memory_space<vmem>>, %arg4: memref<1x2xf32, #tpu.memory_space<vmem>>, %arg5: memref<2x32xf32, #tpu.memory_space<vmem>>, %arg6: memref<1x32xf32, #tpu.memory_space<vmem>>, %arg7: memref<2x32xf32, #tpu.memory_space<vmem>>, %arg8: memref<2x32xf32, #tpu.memory_space<vmem>>) attributes {dimension_semantics = [#tpu.dimension_semantics<parallel>, #tpu.dimension_semantics<arbitrary>], iteration_bounds = array<i64: 1, 1>, scalar_prefetch = 0 : i64, scratch_operands = 1 : i64, tpu.core_type = #tpu.core_type<tc>, window_params = [{transform_indices = @transform_0, window_bounds = array<i64: 2, 256, 32>}, {pipeline_mode = #tpu.pipeline_mode<synchronous>, transform_indices = @transform_1, window_bounds = array<i64: 32, 2>}, {pipeline_mode = #tpu.pipeline_mode<synchronous>, transform_indices = @transform_2, window_bounds = array<i64: 1, 2>}, {pipeline_mode = #tpu.pipeline_mode<synchronous>, transform_indices = @transform_3, window_bounds = array<i64: 2, 32>}, {pipeline_mode = #tpu.pipeline_mode<synchronous>, transform_indices = @transform_4, window_bounds = array<i64: 1, 32>}, {transform_indices = @transform_5, window_bounds = array<i64: 2, 32>}]} {
    %c0_i32 = arith.constant 0 : i32
    %0 = arith.cmpi eq, %arg1, %c0_i32 : i32
    %1 = arith.extui %0 : i1 to i32
    %c0_i32_0 = arith.constant 0 : i32
    %2 = arith.cmpi ne, %1, %c0_i32_0 : i32
    scf.if %2 {
      %cst_9 = arith.constant 0.000000e+00 : f32
      %11 = vector.broadcast %cst_9 : f32 to vector<2x32xf32>
      %c0_10 = arith.constant 0 : index
      %c0_11 = arith.constant 0 : index
      %12 = vector.load %arg8[%c0_10, %c0_11] : memref<2x32xf32, #tpu.memory_space<vmem>>, vector<2x32xf32>
      tpu.vector_store %arg8[%c0_10, %c0_11], %11 {strides = array<i32>} : memref<2x32xf32, #tpu.memory_space<vmem>>, vector<2x32xf32>,
    } else {
    }
    %c0 = arith.constant 0 : index
    %c0_1 = arith.constant 0 : index
    %3 = vector.load %arg8[%c0, %c0_1] : memref<2x32xf32, #tpu.memory_space<vmem>>, vector<2x32xf32>
    %c0_2 = arith.constant 0 : index
    %c0_3 = arith.constant 0 : index
    %c0_4 = arith.constant 0 : index
    %4 = vector.load %arg2[%c0_2, %c0_3, %c0_4] : memref<2x256x32xf32, #tpu.memory_space<vmem>>, vector<2x256x32xf32>
    %cst = arith.constant dense<0.000000e+00> : vector<2x32xf32>
    %5 = vector.multi_reduction <add>, %4, %cst [1] : vector<2x256x32xf32> to vector<2x32xf32>
    %6 = arith.addf %3, %5 : vector<2x32xf32>
    %c0_5 = arith.constant 0 : index
    %c0_6 = arith.constant 0 : index
    %7 = vector.load %arg8[%c0_5, %c0_6] : memref<2x32xf32, #tpu.memory_space<vmem>>, vector<2x32xf32>
    tpu.vector_store %arg8[%c0_5, %c0_6], %6 {strides = array<i32>} : memref<2x32xf32, #tpu.memory_space<vmem>>, vector<2x32xf32>,
    %c0_i32_7 = arith.constant 0 : i32
    %8 = arith.cmpi eq, %arg1, %c0_i32_7 : i32
    %9 = arith.extui %8 : i1 to i32
    %c0_i32_8 = arith.constant 0 : i32
    %10 = arith.cmpi ne, %9, %c0_i32_8 : i32
    scf.if %10 {
      %c0_9 = arith.constant 0 : index
      %c0_10 = arith.constant 0 : index
      %11 = vector.load %arg8[%c0_9, %c0_10] : memref<2x32xf32, #tpu.memory_space<vmem>>, vector<2x32xf32>
      %c0_11 = arith.constant 0 : index
      %c0_12 = arith.constant 0 : index
      %12 = vector.load %arg3[%c0_11, %c0_12] : memref<32x2xf32, #tpu.memory_space<vmem>>, vector<32x2xf32>
      %cst_13 = arith.constant dense<0.000000e+00> : vector<2x2xf32>
      %13 = tpu.matmul %11, %12, %cst_13 {dimension_numbers = #tpu.dot_dimension_numbers<[1], [0], [0], [1], [0, 0, 1, 1], [], []>} : vector<2x32xf32>, vector<32x2xf32>, vector<2x2xf32> -> vector<2x2xf32>
      %c0_14 = arith.constant 0 : index
      %c0_15 = arith.constant 0 : index
      %14 = vector.load %arg4[%c0_14, %c0_15] : memref<1x2xf32, #tpu.memory_space<vmem>>, vector<1x2xf32>
      %15 = vector.broadcast %14 : vector<1x2xf32> to vector<2x2xf32>
      %16 = arith.addf %13, %15 : vector<2x2xf32>
      %cst_16 = arith.constant 0.000000e+00 : f32
      %17 = vector.broadcast %cst_16 : f32 to vector<2x2xf32>
      %18 = arith.maximumf %16, %17 : vector<2x2xf32>
      %c0_17 = arith.constant 0 : index
      %c0_18 = arith.constant 0 : index
      %19 = vector.load %arg5[%c0_17, %c0_18] : memref<2x32xf32, #tpu.memory_space<vmem>>, vector<2x32xf32>
      %cst_19 = arith.constant dense<0.000000e+00> : vector<2x32xf32>
      %20 = tpu.matmul %18, %19, %cst_19 {dimension_numbers = #tpu.dot_dimension_numbers<[1], [0], [0], [1], [0, 0, 1, 1], [], []>} : vector<2x2xf32>, vector<2x32xf32>, vector<2x32xf32> -> vector<2x32xf32>
      %c0_20 = arith.constant 0 : index
      %c0_21 = arith.constant 0 : index
      %21 = vector.load %arg6[%c0_20, %c0_21] : memref<1x32xf32, #tpu.memory_space<vmem>>, vector<1x32xf32>
      %22 = vector.broadcast %21 : vector<1x32xf32> to vector<2x32xf32>
      %23 = arith.addf %20, %22 : vector<2x32xf32>
      %24 = arith.negf %23 : vector<2x32xf32>
      %25 = math.exp %24 : vector<2x32xf32>
      %cst_22 = arith.constant 1.000000e+00 : f32
      %26 = vector.broadcast %cst_22 : f32 to vector<2x32xf32>
      %27 = arith.addf %26, %25 : vector<2x32xf32>
      %28 = arith.divf %26, %27 : vector<2x32xf32>
      %c0_23 = arith.constant 0 : index
      %c0_24 = arith.constant 0 : index
      %29 = vector.load %arg7[%c0_23, %c0_24] : memref<2x32xf32, #tpu.memory_space<vmem>>, vector<2x32xf32>
      tpu.vector_store %arg7[%c0_23, %c0_24], %28 {strides = array<i32>} : memref<2x32xf32, #tpu.memory_space<vmem>>, vector<2x32xf32>,
    } else {
    }
    return
  }
  func.func @transform_0(%arg0: i32, %arg1: i32) -> (i32, i32, i32) {
    %c0_i32 = arith.constant 0 : i32
    %c0_i32_0 = arith.constant 0 : i32
    return %arg0, %arg1, %c0_i32 : i32, i32, i32
  }
  func.func @transform_1(%arg0: i32, %arg1: i32) -> (i32, i32) {
    %c0_i32 = arith.constant 0 : i32
    %c0_i32_0 = arith.constant 0 : i32
    %c0_i32_1 = arith.constant 0 : i32
    return %c0_i32, %c0_i32_0 : i32, i32
  }
  func.func @transform_2(%arg0: i32, %arg1: i32) -> (i32, i32) {
    %c0_i32 = arith.constant 0 : i32
    %c0_i32_0 = arith.constant 0 : i32
    %c0_i32_1 = arith.constant 0 : i32
    return %c0_i32, %c0_i32_0 : i32, i32
  }
  func.func @transform_3(%arg0: i32, %arg1: i32) -> (i32, i32) {
    %c0_i32 = arith.constant 0 : i32
    %c0_i32_0 = arith.constant 0 : i32
    %c0_i32_1 = arith.constant 0 : i32
    return %c0_i32, %c0_i32_0 : i32, i32
  }
  func.func @transform_4(%arg0: i32, %arg1: i32) -> (i32, i32) {
    %c0_i32 = arith.constant 0 : i32
    %c0_i32_0 = arith.constant 0 : i32
    %c0_i32_1 = arith.constant 0 : i32
    return %c0_i32, %c0_i32_0 : i32, i32
  }
  func.func @transform_5(%arg0: i32, %arg1: i32) -> (i32, i32) {
    %c0_i32 = arith.constant 0 : i32
    %c0_i32_0 = arith.constant 0 : i32
    return %arg0, %c0_i32 : i32, i32
  }
}

</mosaic_0001>

<bundles_post_ra>
// kernel: tpu_custom_call.1
= control target key start
LH: loop header
LB: loop body
LE: loop exit
PB: predicated region body
PF: predicated region fallthrough
CT: control target
= control target key end

     0   :  { %vm25_vm0 = vcmask 254976   ;;  %v502_v3 = vmov 0.0|0.0   ;;  %v503_v6 = vmov 0.0   ;;  %vm92_vm1 = vcmask 261120   ;;  %s829_s0 = inlined_call_operand.vmem [shape: f32[2,256,32], index: 0, kind: input, shape index: {}]   ;;  %s830_s1 = inlined_call_operand.vmem [shape: f32[32,2], index: 1, kind: input, shape index: {}]   ;;  %s831_s2 = inlined_call_operand.vmem [shape: f32[1,2], index: 2, kind: input, shape index: {}]   ;;  %s832_s3 = inlined_call_operand.vmem [shape: f32[2,32], index: 3, kind: input, shape index: {}]   ;;  %s833_s4 = inlined_call_operand.vmem [shape: f32[1,32], index: 4, kind: input, shape index: {}]   ;;  %s834_s5 = inlined_call_operand.hbm [shape: f32[2,32], index: 5, kind: output, shape index: {}]  }
   0x1   :  { %v243_v0 = vld [vmem:[%s830_s1] sm:$0xff]  ;;  %v244_v1 = vld [vmem:[%s830_s1 + $0x8] sm:$0xff]  ;;  %v245_v2 = vld [vmem:[%s830_s1 + $0x10] sm:$0xff]  ;;  %464 = vmatprep.subr.bf16.mxu0 %v502_v3  ;;  %26 = vst.msk [vmem:[#allocation2] sm:$0x3] %vm25_vm0, %v503_v6  ;;  %459 = vmatprep.subr.mxu1 %v503_v6  ;;  %vm504_vm2 = vmmov 0  }
   0x2   :  { %v465_v4 = vpack.c.bf16 %v244_v1, %v243_v0  ;;  %v246_v5 = vld [vmem:[%s830_s1 + $0x18] sm:$0xff]  ;;  %v28_v7 = vld [vmem:[%s829_s0] sm:$0xff]  ;;  %v29_v8 = vld [vmem:[%s829_s0 + $0x8] sm:$0xff]  ;;  %456 = vmatprep.mubr.msk.f32.mxu0 %vm504_vm2, %v503_v6  ;;  %461 = vmatprep.mubr.msk.f32.mxu1 %vm504_vm2, %v503_v6 }
   0x3   :  { %v30_v9 = vld [vmem:[%s829_s0 + $0x10] sm:$0xff]  ;;  %v31_v10 = vld [vmem:[%s829_s0 + $0x18] sm:$0xff]  ;;  %v93_v11 = vsel %vm92_vm1, %v28_v7, 0.0  ;;  %v94_v12 = vsel %vm92_vm1, %v29_v8, 0.0  ;;  %v468_v13 = vpack.c.bf16 %v246_v5, %v245_v2  ;;  %v32_v14 = vld [vmem:[%s829_s0 + $0x20] sm:$0xff] }
   0x4   :  { %466 = vmatpush3.bf16.msra.mxu0 %v465_v4  ;;  %v95_v15 = vadd.f32 %v94_v12, %v93_v11  ;;  %v96_v16 = vsel %vm92_vm1, %v30_v9, 0.0  ;;  %v98_v17 = vsel %vm92_vm1, %v31_v10, 0.0  ;;  %v33_v18 = vld [vmem:[%s829_s0 + $0x28] sm:$0xff]  ;;  %v100_v20 = vsel %vm92_vm1, %v32_v14, 0.0  ;;  %v34_v21 = vld [vmem:[%s829_s0 + $0x30] sm:$0xff]  ;;  %v35_v24 = vld [vmem:[%s829_s0 + $0x38] sm:$0xff] }
   0x5   :  { %467 = vmatprep.subr.bf16.mxu0 %v502_v3  ;;  %v102_v23 = vsel %vm92_vm1, %v33_v18, 0.0  ;;  %v104_v26 = vsel %vm92_vm1, %v34_v21, 0.0  ;;  %v36_v27 = vld [vmem:[%s829_s0 + $0x40] sm:$0xff]  ;;  %v61_v30 = vld [vmem:[%s829_s0 + $0x108] sm:$0xff]  ;;  %v106_v31 = vsel %vm92_vm1, %v35_v24, 0.0  ;;  %v62_v33 = vld [vmem:[%s829_s0 + $0x110] sm:$0xff] }
   0x6   :  { %v97_v19 = vadd.f32 %v96_v16, %v95_v15  ;;  %v60_v29 = vld [vmem:[%s829_s0 + $0x100] sm:$0xff]  ;;  %v37_v32 = vld [vmem:[%s829_s0 + $0x48] sm:$0xff]  ;;  %v63_v34 = vld [vmem:[%s829_s0 + $0x118] sm:$0xff]  ;;  %v163_v37 = vsel %vm92_vm1, %v61_v30, 0.0  ;;  %v108_v39 = vsel %vm92_vm1, %v36_v27, 0.0  ;;  %v165_v41 = vsel %vm92_vm1, %v62_v33, 0.0 }
   0x7   :  { %v162_v36 = vsel %vm92_vm1, %v60_v29, 0.0  ;;  %v64_v38 = vld [vmem:[%s829_s0 + $0x120] sm:$0xff]  ;;  %v38_v42 = vld [vmem:[%s829_s0 + $0x50] sm:$0xff]  ;;  %v167_v44 = vsel %vm92_vm1, %v63_v34, 0.0  ;;  %v65_v45 = vld [vmem:[%s829_s0 + $0x128] sm:$0xff]  ;;  %v110_v46 = vsel %vm92_vm1, %v37_v32, 0.0 }
   0x8   :  { %469 = vmatpush3.bf16.msra.mxu0 %v468_v13  ;;  %v99_v22 = vadd.f32 %v98_v17, %v97_v19  ;;  %v164_v40 = vadd.f32 %v163_v37, %v162_v36  ;;  %v39_v48 = vld [vmem:[%s829_s0 + $0x58] sm:$0xff]  ;;  %v169_v50 = vsel %vm92_vm1, %v64_v38, 0.0  ;;  %v66_v51 = vld [vmem:[%s829_s0 + $0x130] sm:$0xff]  ;;  %v112_v52 = vsel %vm92_vm1, %v38_v42, 0.0  ;;  %v40_v54 = vld [vmem:[%s829_s0 + $0x60] sm:$0xff] }
   0x9   :  { %v171_v56 = vsel %vm92_vm1, %v65_v45, 0.0  ;;  %v67_v57 = vld [vmem:[%s829_s0 + $0x138] sm:$0xff]  ;;  %v114_v58 = vsel %vm92_vm1, %v39_v48, 0.0  ;;  %v41_v60 = vld [vmem:[%s829_s0 + $0x68] sm:$0xff]  ;;  %v173_v62 = vsel %vm92_vm1, %v66_v51, 0.0  ;;  %v68_v63 = vld [vmem:[%s829_s0 + $0x140] sm:$0xff] }
   0xa   :  { %v101_v25 = vadd.f32 %v100_v20, %v99_v22  ;;  %v166_v47 = vadd.f32 %v165_v41, %v164_v40  ;;  %v116_v0 = vsel %vm92_vm1, %v40_v54, 0.0  ;;  %v42_v2 = vld [vmem:[%s829_s0 + $0x70] sm:$0xff]  ;;  %v175_v4 = vsel %vm92_vm1, %v67_v57, 0.0  ;;  %v69_v5 = vld [vmem:[%s829_s0 + $0x148] sm:$0xff] }
   0xb   :  { %v118_v6 = vsel %vm92_vm1, %v41_v60, 0.0 }
   0xc   :  { %v103_v28 = vadd.f32 %v102_v23, %v101_v25  ;;  %v168_v53 = vadd.f32 %v167_v44, %v166_v47 }
   0xe   :  { %v105_v35 = vadd.f32 %v104_v26, %v103_v28  ;;  %v170_v59 = vadd.f32 %v169_v50, %v168_v53 }
  0x10   :  { %v107_v43 = vadd.f32 %v106_v31, %v105_v35  ;;  %v172_v1 = vadd.f32 %v171_v56, %v170_v59 }
  0x12   :  { %v109_v49 = vadd.f32 %v108_v39, %v107_v43  ;;  %v174_v7 = vadd.f32 %v173_v62, %v172_v1 }
  0x14   :  { %v111_v55 = vadd.f32 %v110_v46, %v109_v49 }
  0x16   :  { %v113_v61 = vadd.f32 %v112_v52, %v111_v55 }
  0x18   :  { %v115_v3 = vadd.f32 %v114_v58, %v113_v61 }
  0x19   :  { %10 = vsyncpa [#allocation4], 0  ;;  %v43_v8 = vld [vmem:[%s829_s0 + $0x78] sm:$0xff]  ;;  %v177_v10 = vsel %vm92_vm1, %v68_v63, 0.0  ;;  %v70_v11 = vld [vmem:[%s829_s0 + $0x150] sm:$0xff]  ;;  %v120_v12 = vsel %vm92_vm1, %v42_v2, 0.0  ;;  %v176_v13 = vadd.f32 %v175_v4, %v174_v7 }
  0x1a   :  { %v117_v9 = vadd.f32 %v116_v0, %v115_v3  ;;  %v44_v14 = vld [vmem:[%s829_s0 + $0x80] sm:$0xff]  ;;  %v179_v16 = vsel %vm92_vm1, %v69_v5, 0.0  ;;  %v71_v17 = vld [vmem:[%s829_s0 + $0x158] sm:$0xff]  ;;  %v122_v18 = vsel %vm92_vm1, %v43_v8, 0.0  ;;  %v45_v20 = vld [vmem:[%s829_s0 + $0x88] sm:$0xff]  ;;  %v181_v22 = vsel %vm92_vm1, %v70_v11, 0.0 }
  0x1b   :  { %v178_v19 = vadd.f32 %v177_v10, %v176_v13  ;;  %v72_v23 = vld [vmem:[%s829_s0 + $0x160] sm:$0xff]  ;;  %v124_v24 = vsel %vm92_vm1, %v44_v14, 0.0  ;;  %v46_v26 = vld [vmem:[%s829_s0 + $0x90] sm:$0xff]  ;;  %v183_v28 = vsel %vm92_vm1, %v71_v17, 0.0  ;;  %v73_v29 = vld [vmem:[%s829_s0 + $0x168] sm:$0xff]  ;;  %v126_v30 = vsel %vm92_vm1, %v45_v20, 0.0 }
  0x1c   :  { %v119_v15 = vadd.f32 %v118_v6, %v117_v9  ;;  %v47_v32 = vld [vmem:[%s829_s0 + $0x98] sm:$0xff]  ;;  %v185_v34 = vsel %vm92_vm1, %v72_v23, 0.0  ;;  %v74_v35 = vld [vmem:[%s829_s0 + $0x170] sm:$0xff]  ;;  %v128_v36 = vsel %vm92_vm1, %v46_v26, 0.0  ;;  %v48_v38 = vld [vmem:[%s829_s0 + $0xa0] sm:$0xff]  ;;  %v187_v40 = vsel %vm92_vm1, %v73_v29, 0.0 }
  0x1d   :  { %v180_v25 = vadd.f32 %v179_v16, %v178_v19  ;;  %v75_v41 = vld [vmem:[%s829_s0 + $0x178] sm:$0xff]  ;;  %v130_v42 = vsel %vm92_vm1, %v47_v32, 0.0  ;;  %v49_v44 = vld [vmem:[%s829_s0 + $0xa8] sm:$0xff]  ;;  %v189_v46 = vsel %vm92_vm1, %v74_v35, 0.0  ;;  %v76_v47 = vld [vmem:[%s829_s0 + $0x180] sm:$0xff]  ;;  %v132_v48 = vsel %vm92_vm1, %v48_v38, 0.0 }
  0x1e   :  { %v121_v21 = vadd.f32 %v120_v12, %v119_v15  ;;  %v50_v50 = vld [vmem:[%s829_s0 + $0xb0] sm:$0xff]  ;;  %v191_v52 = vsel %vm92_vm1, %v75_v41, 0.0  ;;  %v77_v53 = vld [vmem:[%s829_s0 + $0x188] sm:$0xff]  ;;  %v134_v54 = vsel %vm92_vm1, %v49_v44, 0.0  ;;  %v51_v56 = vld [vmem:[%s829_s0 + $0xb8] sm:$0xff]  ;;  %v193_v58 = vsel %vm92_vm1, %v76_v47, 0.0 }
  0x1f   :  { %v182_v31 = vadd.f32 %v181_v22, %v180_v25  ;;  %v78_v59 = vld [vmem:[%s829_s0 + $0x190] sm:$0xff]  ;;  %v136_v60 = vsel %vm92_vm1, %v50_v50, 0.0  ;;  %v52_v62 = vld [vmem:[%s829_s0 + $0xc0] sm:$0xff]  ;;  %v195_v0 = vsel %vm92_vm1, %v77_v53, 0.0  ;;  %v79_v1 = vld [vmem:[%s829_s0 + $0x198] sm:$0xff]  ;;  %v138_v2 = vsel %vm92_vm1, %v51_v56, 0.0 }
  0x20   :  { %v123_v27 = vadd.f32 %v122_v18, %v121_v21  ;;  %v53_v4 = vld [vmem:[%s829_s0 + $0xc8] sm:$0xff]  ;;  %v197_v6 = vsel %vm92_vm1, %v78_v59, 0.0  ;;  %v80_v7 = vld [vmem:[%s829_s0 + $0x1a0] sm:$0xff]  ;;  %v140_v8 = vsel %vm92_vm1, %v52_v62, 0.0  ;;  %v54_v10 = vld [vmem:[%s829_s0 + $0xd0] sm:$0xff]  ;;  %v199_v12 = vsel %vm92_vm1, %v79_v1, 0.0 }
  0x21   :  { %v184_v37 = vadd.f32 %v183_v28, %v182_v31  ;;  %v81_v13 = vld [vmem:[%s829_s0 + $0x1a8] sm:$0xff]  ;;  %v142_v14 = vsel %vm92_vm1, %v53_v4, 0.0  ;;  %v55_v16 = vld [vmem:[%s829_s0 + $0xd8] sm:$0xff]  ;;  %v201_v18 = vsel %vm92_vm1, %v80_v7, 0.0  ;;  %v82_v19 = vld [vmem:[%s829_s0 + $0x1b0] sm:$0xff]  ;;  %v144_v20 = vsel %vm92_vm1, %v54_v10, 0.0 }
  0x22   :  { %v125_v33 = vadd.f32 %v124_v24, %v123_v27  ;;  %v56_v22 = vld [vmem:[%s829_s0 + $0xe0] sm:$0xff]  ;;  %v203_v24 = vsel %vm92_vm1, %v81_v13, 0.0  ;;  %v83_v25 = vld [vmem:[%s829_s0 + $0x1b8] sm:$0xff]  ;;  %v146_v26 = vsel %vm92_vm1, %v55_v16, 0.0  ;;  %v57_v28 = vld [vmem:[%s829_s0 + $0xe8] sm:$0xff]  ;;  %vm233_vm3 = vcmask 1041409  }
  0x23   :  { %v186_v43 = vadd.f32 %v185_v34, %v184_v37  ;;  %v84_v31 = vld [vmem:[%s829_s0 + $0x1c0] sm:$0xff]  ;;  %v148_v32 = vsel %vm92_vm1, %v56_v22, 0.0  ;;  %v58_v34 = vld [vmem:[%s829_s0 + $0xf0] sm:$0xff]  ;;  %v85_v37 = vld [vmem:[%s829_s0 + $0x1c8] sm:$0xff]  ;;  %v150_v38 = vsel %vm92_vm1, %v57_v28, 0.0  ;;  %vm340_vm4 = vcmask 1041408  }
  0x24   :  { %v127_v39 = vadd.f32 %v126_v30, %v125_v33  ;;  %v205_v30 = vsel %vm92_vm1, %v82_v19, 0.0  ;;  %v152_v44 = vsel %vm92_vm1, %v58_v34, 0.0  ;;  %v211_v47 = vsel %vm92_vm1, %v85_v37, 0.0  ;;  %v88_v53 = vld [vmem:[%s829_s0 + $0x1e0] sm:$0xff] }
  0x25   :  { %v188_v49 = vadd.f32 %v187_v40, %v186_v43  ;;  %v59_v40 = vld [vmem:[%s829_s0 + $0xf8] sm:$0xff]  ;;  %v86_v43 = vld [vmem:[%s829_s0 + $0x1d0] sm:$0xff]  ;;  %v328_v22 = vld [vmem:[%s832_s3] sm:$0x3]  ;;  %vm336_vm5 = vcmask 15360   ;;  %s505_s3 = smov [#allocation3]  }
  0x26   :  { %v129_v45 = vadd.f32 %v128_v36, %v127_v39  ;;  %v207_v36 = vsel %vm92_vm1, %v83_v25, 0.0  ;;  %460 = vmatpush3.msk.msra.mxu1 %vm340_vm4, %v328_v22  ;;  %v437_v28 = vld [vmem:[%s833_s4] ss:$0 sm:$0xff] }
  0x27   :  { %v190_v55 = vadd.f32 %v189_v46, %v188_v49  ;;  %v154_v49 = vsel %vm92_vm1, %v59_v40, 0.0 }
  0x28   :  { %v131_v51 = vadd.f32 %v130_v42, %v129_v45  ;;  %v209_v42 = vsel %vm92_vm1, %v84_v31, 0.0 }
  0x29   :  { %v192_v61 = vadd.f32 %v191_v52, %v190_v55  ;;  %v213_v52 = vsel %vm92_vm1, %v86_v43, 0.0 }
  0x2a   :  { %v133_v57 = vadd.f32 %v132_v48, %v131_v51  ;;  %v87_v48 = vld [vmem:[%s829_s0 + $0x1d8] sm:$0xff] }
  0x2b   :  { %v194_v3 = vadd.f32 %v193_v58, %v192_v61  ;;  %v215_v56 = vsel %vm92_vm1, %v87_v48, 0.0  ;;  %v90_v61 = vld [vmem:[%s829_s0 + $0x1f0] sm:$0xff] }
  0x2c   :  { %v135_v63 = vadd.f32 %v134_v54, %v133_v57  ;;  %v89_v57 = vld [vmem:[%s829_s0 + $0x1e8] sm:$0xff] }
  0x2d   :  { %v196_v9 = vadd.f32 %v195_v0, %v194_v3  ;;  %v91_v0 = vld [vmem:[%s829_s0 + $0x1f8] sm:$0xff]  ;;  %v221_v3 = vsel %vm92_vm1, %v90_v61, 0.0 }
  0x2e   :  { %v137_v5 = vadd.f32 %v136_v60, %v135_v63  ;;  %v217_v60 = vsel %vm92_vm1, %v88_v53, 0.0  ;;  %v219_v63 = vsel %vm92_vm1, %v89_v57, 0.0 }
  0x2f   :  { %v198_v15 = vadd.f32 %v197_v6, %v196_v9 }
  0x30   :  { %v139_v11 = vadd.f32 %v138_v2, %v137_v5  ;;  %v223_v5 = vsel %vm92_vm1, %v91_v0, 0.0 }
  0x31   :  { %v200_v21 = vadd.f32 %v199_v12, %v198_v15 }
  0x32   :  { %v141_v17 = vadd.f32 %v140_v8, %v139_v11 }
  0x33   :  { %v202_v27 = vadd.f32 %v201_v18, %v200_v21 }
  0x34   :  { %v143_v23 = vadd.f32 %v142_v14, %v141_v17  ;;  %v27_v17 = vld [vmem:[#allocation2] sm:$0x3] }
  0x35   :  { %v204_v33 = vadd.f32 %v203_v24, %v202_v27 }
  0x36   :  { %v145_v29 = vadd.f32 %v144_v20, %v143_v23  ;;  %v435_v23 = vld [vmem:[%s831_s2] ss:$0 sm:$0xff]  ;;  %s427_s2 = sshll.u32 %s505_s3, 4  ;;  %s428_s2 = int_to_ptr.vmem [resolvable:$true] %s427_s2 }
  0x37   :  { %v206_v39 = vadd.f32 %v205_v30, %v204_v33  ;;  %s478_s29 = scalar_lea.vmem %s428_s2, 32  ;;  %p483_p1 = scmp.lt.s32.totalorder %s428_s2, %s428_s2 }
  0x38   :  { %v147_v35 = vadd.f32 %v146_v26, %v145_v29  ;;  %p479_p0 = scmp.ne.s32.totalorder %s428_s2, %s478_s29  ;;  %p484_p2 = scmp.lt.s32.totalorder %s478_s29, %s478_s29 }
  0x39   :  { %v208_v45 = vadd.f32 %v207_v36, %v206_v39 }
  0x3a   :  { %v149_v41 = vadd.f32 %v148_v32, %v147_v35  ;;  %p485_p3 = por %p484_p2, %p483_p1 }
  0x3b   :  { %v210_v50 = vadd.f32 %v209_v42, %v208_v45 }
  0x3c   :  { %v151_v46 = vadd.f32 %v150_v38, %v149_v41  ;;  %p486_p4 = pnand %p485_p3, %p479_p0 }
  0x3d   :  { %v212_v54 = vadd.f32 %v211_v47, %v210_v50 }
  0x3e   :  { %v153_v51 = vadd.f32 %v152_v44, %v151_v46 }
  0x3f   :  { %v214_v58 = vadd.f32 %v213_v52, %v212_v54 }
  0x40   :  { %v155_v55 = vadd.f32 %v154_v49, %v153_v51 }
  0x41   :  { %v216_v62 = vadd.f32 %v215_v56, %v214_v58 }
  0x42   :  { %v156_v59 = vrot.slane %v155_v55, 4 }
  0x43   :  { %v218_v2 = vadd.f32 %v217_v60, %v216_v62 }
  0x44   :  { %v157_v1 = vadd.f32 %v156_v59, %v155_v55 }
  0x45   :  { %v220_v4 = vadd.f32 %v219_v63, %v218_v2 }
  0x46   :  { %v158_v6 = vrot.slane %v157_v1, 2 }
  0x47   :  { %v222_v7 = vadd.f32 %v221_v3, %v220_v4 }
  0x48   :  { %v159_v9 = vadd.f32 %v158_v6, %v157_v1 }
  0x49   :  { %v224_v8 = vadd.f32 %v223_v5, %v222_v7 }
  0x4a   :  { %v160_v12 = vrot.slane %v159_v9, 1 }
  0x4b   :  { %v225_v10 = vrot.slane %v224_v8, 4 }
  0x4c   :  { %v161_v15 = vadd.f32 %v160_v12, %v159_v9 }
  0x4d   :  { %v226_v11 = vadd.f32 %v225_v10, %v224_v8 }
  0x4f   :  { %v227_v13 = vrot.slane %v226_v11, 2 }
  0x51   :  { %v228_v14 = vadd.f32 %v227_v13, %v226_v11 }
  0x53   :  { %v229_v16 = vrot.slane %v228_v14, 1 }
  0x55   :  { %v230_v18 = vadd.f32 %v229_v16, %v228_v14 }
  0x57   :  { %v234_v19 = vsel %vm233_vm3, %v230_v18, %v161_v15 }
  0x58   :  { %v236_v20 = vadd.f32 %v234_v19, %v27_v17 }
  0x5a   :  { %238 = vst.msk [vmem:[#allocation2] sm:$0x3] %vm25_vm0, %v236_v20 }
  0x61   :  { %v242_v21 = vld [vmem:[#allocation2] sm:$0x3] }
  0x62   :  { %457 = vmatmul.mubr.msk.f32.vlgmr.msra.gmra.mrb[0].mxu0 %vm92_vm1, %v242_v21 }
 0x135   :  { %v323_v24 = vpop.f32.mrb[0].mxu0 }
 0x136   :  { %v324_v25 = vadd.f32 %v435_v23, %v323_v24  ;;  %v458_v26 = vpop.f32.mrb[1].mxu0 }
 0x138   :  { %v327_v27 = vmax.f32 %v324_v25, 0.0 }
 0x13a   :  { %462 = vmatmul.mubr.msk.f32.vlgmr.msra.gmra.mrb[0].mxu1 %vm336_vm5, %v327_v27 }
 0x20d   :  { %v410_v29 = vpop.f32.mrb[0].mxu1 }
 0x20e   :  { %v411_v30 = vadd.f32 %v437_v28, %v410_v29  ;;  %v463_v31 = vpop.f32.mrb[1].mxu1 }
 0x210   :  { %v440_v32 = vmul.f32 -1.442695, %v411_v30 }
 0x212   :  { %474 = vpow2.f32 %v440_v32 }
 0x21c   :  { %v475_v33 = vpop.eup %474 }
 0x21d   :  { %v417_v34 = vadd.f32 1.0, %v475_v33 }
 0x21f   :  { %476 = vrcp.f32 %v417_v34 }
 0x229   :  { %v477_v35 = vpop.eup %476 }
 0x22a   :  { %420 = vst.msk [vmem:[#allocation3] sm:$0x3] %vm25_vm0, %v477_v35 }
 0x22b   :  { %489 = shalt.err (!%p486_p4)
}
 0x22c   :  { %s490_s6 = scalar_lea.hbm %s834_s5, 32 }
 0x22d   :  { %p491_p5 = scmp.ne.s32.totalorder %s834_s5, %s490_s6  ;;  %p494_p6 = scmp.lt.u32.totalorder %s490_s6, %s834_s5 }
 0x22f   :  { %p496_p7 = pnand %p494_p6, %p491_p5 }
 0x231   :  { %499 = shalt.err (!%p496_p7)
}
 0x232   :  { %430 = dma.vmem_to_hbm [thread:$0]  %s428_s2, 32, %s834_s5, [#allocation4]  }
 0x233   :  { %500 = dma.done.wait [#allocation4], 32  }
 0x234   :  { %501 = vsyncadd [#allocation4], 4294967264 }
 0x235   :  { %434 = vsyncpa [#allocation4], 1 }

</bundles_post_ra>
